<compile_context>
chip_gen: v5e
topology: v5e:2x2
jax: 0.10.0
libtpu: 0.0.40
codegen_flags: <defaults>
</compile_context>

<pallas_src>
import functools
import math

import jax
import jax.numpy as jnp
from jax.experimental import pallas as pl
from jax.experimental.pallas import tpu as pltpu

_LANE = 128


def _round_up(n, m):
    return ((n + m - 1) // m) * m


def _vmem_budget_bytes():
    """~75% of per-core VMEM: 96 MiB on v5e/v6e (128 MiB), 48 MiB on v7x (64 MiB)."""
    try:
        cap = int(pltpu.get_tpu_info().vmem_capacity_bytes)
    except Exception:
        cap = 64 * 1024 * 1024  # conservative fallback: v7x per-TC VMEM
    return max(int(cap * 0.75), 32 * 1024 * 1024)


def _choose_row_tile(M, d_in, d_h_max, weight_bytes, vmem_budget, tm_user):
    """Row tile sized from the VMEM budget and a ~8-grid-step target."""
    # Per-row VMEM bytes: f32 x tile (double-buffered) + f32 accumulator
    # + bf16 hidden activations + f32 lane-dense output (double-buffered).
    per_row = 2 * 4 * d_in + 4 * d_h_max + 2 * d_h_max + 2 * 4
    # Keep weights (counted x2 in case Buffered(1) is unavailable) plus row
    # tiles under half the budget; the rest is headroom for compiler temps.
    usable = vmem_budget // 2 - 2 * weight_bytes
    tm_vmem = usable // per_row if usable > 0 else _LANE
    # Target ~8 grid steps: >=2-4 per TensorCore on v7x (megacore) and enough
    # steps for BlockSpec double-buffering to hide the x-tile DMA on v5e/v6e
    # (single TC, no "split for two cores" cap).
    tm_steps = _round_up(max(pl.cdiv(M, 8), 1), _LANE)
    tm = min(int(tm_vmem), tm_steps, 4096)
    if tm_user is not None:
        tm = min(tm, max(int(tm_user), _LANE))
    return max(_LANE, (tm // _LANE) * _LANE)


def _mlp_kernel(n_layers, x_ref, *refs):
    """x_ref: (tm, d_in) f32; refs = (w0, b0, ..., w_{L-1}, b_{L-1}, wc_row, scores_ref).

    w_i: (d_prev, d_h) bf16 ;  b_i: (1, d_h) f32 ;  wc_row: (1, d_h) bf16 ;
    scores_ref: (1, 1, tm) f32 -- lane-dense scores for this row tile.
    """
    params = refs[:2 * n_layers + 1]
    scores_ref = refs[2 * n_layers + 1]

    h = x_ref[...].astype(jnp.bfloat16)              # f32 -> bf16 on the VPU
    for i in range(n_layers):
        w = params[2 * i][...]                       # bf16 (d_prev, d_h)
        b = params[2 * i + 1][...]                   # f32  (1, d_h)
        acc = jnp.dot(h, w, preferred_element_type=jnp.float32) + b
        h = jnp.maximum(acc, 0.0).astype(jnp.bfloat16)   # ReLU in f32 -> bf16

    wc = params[2 * n_layers][...]                   # bf16 (1, d_h)
    # Classifier (output width 1) as wc @ h^T -> (1, tm): one MXU pass whose
    # result is already lane-dense.  (If Mosaic materializes an XLU transpose
    # of h for this contraction it rides the idle XLU slot at these sizes;
    # re-check via pl.lower_as_mlir before scaling d_h into the thousands.)
    s = jax.lax.dot_general(wc, h, (((1,), (1,)), ((), ())),
                            preferred_element_type=jnp.float32)   # (1, tm) f32
    scores_ref[...] = s.reshape(scores_ref.shape)


def prepare_params(params):
    """One-time parameter prep (do NOT call per forward).

    params: list of (W [d_in, d_out] f32, b [d_out] f32); last pair is the
            classifier (d_out == 1).  Weights are already pre-transposed so
            that nn.Linear(x) == x @ W + b.
    Returns (layer_params, wc_row, bc):
      layer_params: [(W bf16 [d_in,d_out], b f32 [1,d_out]), ...]
      wc_row:       classifier weight as a bf16 row (1, d_h)
      bc:           classifier bias as an f32 scalar (folded in the wrapper)
    """
    assert params[-1][0].shape[1] == 1, "classifier must have a single output"
    layer_params = []
    for (w, b) in params[:-1]:
        layer_params.append((jnp.asarray(w, jnp.bfloat16),
                             jnp.asarray(b, jnp.float32).reshape(1, -1)))
    wc, bc = params[-1]
    wc_row = jnp.asarray(wc, jnp.bfloat16).reshape(1, -1)
    bc_scalar = jnp.asarray(bc, jnp.float32).reshape(())
    return layer_params, wc_row, bc_scalar


def mlp_forward(x, lengths, prepared, *, threshold=0.4, tm=None):
    """x: [bs, seq, d_in] f32; lengths: per-example valid lengths (ints).

    prepared: output of prepare_params().
    Returns (scores [bs, seq, 1] f32, tag_seq [bs, seq] bool) as DEVICE arrays
    -- no host sync in the hot path.  Use tags_to_lists() for the per-example
    Python lists the PyTorch module returns.
    """
    del lengths  # only needed for the (host-side) tag-list conversion
    layer_params, wc_row, bc = prepared
    bs, seq, d_in = x.shape
    n_layers = len(layer_params)
    assert 0.0 < threshold < 1.0

    flat_params = []
    for (w, b) in layer_params:
        flat_params += [w, b]
    flat_params.append(wc_row)
    weight_bytes = sum(int(p.size) * p.dtype.itemsize for p in flat_params)
    d_h_max = max([w.shape[1] for (w, _) in layer_params] + [d_in])

    M = bs * seq
    vmem_budget = _vmem_budget_bytes()
    tm_eff = _choose_row_tile(M, d_in, d_h_max, weight_bytes, vmem_budget, tm)
    M_pad = _round_up(M, tm_eff)
    grid = M_pad // tm_eff

    x2d = x.reshape(M, d_in).astype(jnp.float32)
    if M_pad != M:
        # Pad only when the row count does not divide the tile.  Padded rows
        # produce garbage scores in scores_tiled; they are sliced off below,
        # before the bias add / thresholding.
        x2d = jnp.pad(x2d, ((0, M_pad - M), (0, 0)))

    kernel = functools.partial(_mlp_kernel, n_layers)
    out_shape = jax.ShapeDtypeStruct((grid, 1, tm_eff), jnp.float32)

    def _param_specs(single_buffer):
        specs = []
        for p in flat_params:
            if single_buffer:
                try:
                    specs.append(pl.BlockSpec(p.shape, lambda i: (0, 0),
                                              pipeline_mode=pl.Buffered(1)))
                    continue
                except TypeError:
                    pass  # pipeline_mode kwarg not available in this JAX
            specs.append(pl.BlockSpec(p.shape, lambda i: (0, 0)))
        return specs

    def _call(single_buffer):
        return pl.pallas_call(
            kernel,
            out_shape=out_shape,
            grid_spec=pltpu.PrefetchScalarGridSpec(
                num_scalar_prefetch=0,
                grid=(grid,),
                in_specs=[pl.BlockSpec((tm_eff, d_in), lambda i: (i, 0))]
                         + _param_specs(single_buffer),
                out_specs=pl.BlockSpec((1, 1, tm_eff), lambda i: (i, 0, 0)),
            ),
            compiler_params=pltpu.CompilerParams(
                dimension_semantics=("parallel",),
                vmem_limit_bytes=vmem_budget),
        )(x2d, *flat_params)

    try:
        # Constant-index weight blocks never change across grid steps;
        # single-buffer them to halve their VMEM footprint (matters most on
        # v7x's 64 MiB per-TC VMEM).
        scores_tiled = _call(True)
    except Exception:
        # Buffered(1) not supported by this JAX/Mosaic build: fall back to
        # default double-buffering (already accounted for in the VMEM budget).
        scores_tiled = _call(False)

    scores = scores_tiled.reshape(M_pad)[:M].reshape(bs, seq, 1) + bc

    # sigmoid(s) > t  <=>  s > logit(t)  (monotonic) -> no EUP transcendental.
    thr_logit = math.log(threshold / (1.0 - threshold))
    tag_seq = scores[:, :, 0] > thr_logit
    return scores, tag_seq


def tags_to_lists(tag_seq, lengths):
    """Blocking host transfer -> per-example Python lists (PyTorch semantics).

    Kept out of mlp_forward so back-to-back forward calls are not serialized
    by a device->host sync."""
    host = jax.device_get(tag_seq)
    return [host[i].tolist()[:int(l)] for i, l in enumerate(lengths)]


def init_params(key, input_size, hidden_units, layers=1):
    """Deterministic f32 init mimicking nn.Linear's uniform(-1/sqrt(fan_in), .).

    Weights are stored pre-transposed as [d_in, d_out]."""
    params = []
    dims = [input_size] + [hidden_units] * layers
    keys = jax.random.split(key, layers + 1)
    for i in range(layers):
        d_in, d_out = dims[i], dims[i + 1]
        bound = 1.0 / math.sqrt(d_in)
        kw, kb = jax.random.split(keys[i])
        w = jax.random.uniform(kw, (d_in, d_out), jnp.float32, -bound, bound)
        b = jax.random.uniform(kb, (d_out,), jnp.float32, -bound, bound)
        params.append((w, b))
    # classifier: Linear(hidden_units, 1)
    bound = 1.0 / math.sqrt(hidden_units)
    kw, kb = jax.random.split(keys[-1])
    wc = jax.random.uniform(kw, (hidden_units, 1), jnp.float32, -bound, bound)
    bc = jax.random.uniform(kb, (1,), jnp.float32, -bound, bound)
    params.append((wc, bc))
    return params


if __name__ == "__main__":
    key = jax.random.PRNGKey(0)
    bs, seq, input_size, hidden_units = 2, 8, 32, 32
    layers = 1

    kx, kp = jax.random.split(key)
    x = jax.random.normal(kx, (bs, seq, input_size), jnp.float32)
    lengths = [8, 5]
    params = init_params(kp, input_size, hidden_units, layers)
    prepared = prepare_params(params)          # one-time bf16 weight prep

    scores, tag_seq = mlp_forward(x, lengths, prepared, threshold=0.4)
    jax.block_until_ready((scores, tag_seq))
    tags = tags_to_lists(tag_seq, lengths)

    # Reference 1: pure-JAX with the same bf16-operand / f32-accumulation recipe.
    M = bs * seq
    h = x.reshape(M, input_size).astype(jnp.bfloat16)
    for (w, b) in params[:-1]:
        acc = jnp.dot(h, w.astype(jnp.bfloat16),
                      preferred_element_type=jnp.float32) + b.reshape(1, -1)
        h = jnp.maximum(acc, 0.0).astype(jnp.bfloat16)
    wc, bc = params[-1]
    ref_scores = (jnp.dot(h, wc.astype(jnp.bfloat16),
                          preferred_element_type=jnp.float32)
                  + bc.reshape(1, -1)).reshape(bs, seq, 1)
    assert jnp.allclose(scores, ref_scores, atol=1e-3, rtol=1e-3)

    # Reference 2: full-f32 model -- loose sanity bound on the bf16 drift
    # (review note: tags near the decision boundary can flip vs f32 PyTorch).
    hf = x.reshape(M, input_size)
    for (w, b) in params[:-1]:
        hf = jnp.maximum(jnp.dot(hf, w) + b.reshape(1, -1), 0.0)
    ref_scores_f32 = (jnp.dot(hf, wc) + bc.reshape(1, -1)).reshape(bs, seq, 1)
    assert jnp.allclose(scores, ref_scores_f32, atol=1e-1, rtol=1e-1)

    ref_tag_seq = jax.device_get(jax.nn.sigmoid(ref_scores)[:, :, 0] > 0.4)
    ref_tags = [ref_tag_seq[i].tolist()[:l] for i, l in enumerate(lengths)]
    assert tags == ref_tags

    print("KERNEL_OK")
</pallas_src>

<mosaic_0001>
module attributes {stable_mosaic.version = 11 : i64} {
  func.func @_mlp_kernel(%arg0: i32, %arg1: memref<128x32xf32, #tpu.memory_space<vmem>>, %arg2: memref<32x32xbf16, #tpu.memory_space<vmem>>, %arg3: memref<1x32xf32, #tpu.memory_space<vmem>>, %arg4: memref<1x32xbf16, #tpu.memory_space<vmem>>, %arg5: memref<1x1x128xf32, #tpu.memory_space<vmem>>) attributes {dimension_semantics = [#tpu.dimension_semantics<parallel>], iteration_bounds = array<i64: 1>, scalar_prefetch = 0 : i64, scratch_operands = 0 : i64, tpu.core_type = #tpu.core_type<tc>, window_params = [{transform_indices = @transform_0, window_bounds = array<i64: 128, 32>}, {pipeline_mode = #tpu.pipeline_mode<synchronous>, transform_indices = @transform_1, window_bounds = array<i64: 32, 32>}, {pipeline_mode = #tpu.pipeline_mode<synchronous>, transform_indices = @transform_2, window_bounds = array<i64: 1, 32>}, {pipeline_mode = #tpu.pipeline_mode<synchronous>, transform_indices = @transform_3, window_bounds = array<i64: 1, 32>}, {transform_indices = @transform_4, window_bounds = array<i64: 1, 1, 128>}]} {
    %c0 = arith.constant 0 : index
    %c0_0 = arith.constant 0 : index
    %0 = vector.load %arg1[%c0, %c0_0] : memref<128x32xf32, #tpu.memory_space<vmem>>, vector<128x32xf32>
    %1 = arith.truncf %0 : vector<128x32xf32> to vector<128x32xbf16>
    %c0_1 = arith.constant 0 : index
    %c0_2 = arith.constant 0 : index
    %2 = vector.load %arg2[%c0_1, %c0_2] : memref<32x32xbf16, #tpu.memory_space<vmem>>, vector<32x32xbf16>
    %c0_3 = arith.constant 0 : index
    %c0_4 = arith.constant 0 : index
    %3 = vector.load %arg3[%c0_3, %c0_4] : memref<1x32xf32, #tpu.memory_space<vmem>>, vector<1x32xf32>
    %cst = arith.constant dense<0.000000e+00> : vector<128x32xf32>
    %4 = tpu.matmul %1, %2, %cst {dimension_numbers = #tpu.dot_dimension_numbers<[1], [0], [0], [1], [0, 0, 1, 1], [], []>} : vector<128x32xbf16>, vector<32x32xbf16>, vector<128x32xf32> -> vector<128x32xf32>
    %5 = vector.broadcast %3 : vector<1x32xf32> to vector<128x32xf32>
    %6 = arith.addf %4, %5 : vector<128x32xf32>
    %cst_5 = arith.constant 0.000000e+00 : f32
    %7 = vector.broadcast %cst_5 : f32 to vector<128x32xf32>
    %8 = arith.maximumf %6, %7 : vector<128x32xf32>
    %9 = arith.truncf %8 : vector<128x32xf32> to vector<128x32xbf16>
    %c0_6 = arith.constant 0 : index
    %c0_7 = arith.constant 0 : index
    %10 = vector.load %arg4[%c0_6, %c0_7] : memref<1x32xbf16, #tpu.memory_space<vmem>>, vector<1x32xbf16>
    %cst_8 = arith.constant dense<0.000000e+00> : vector<1x128xf32>
    %11 = tpu.matmul %10, %9, %cst_8 {dimension_numbers = #tpu.dot_dimension_numbers<[1], [1], [0], [0], [0, 0, 1, 0], [], []>} : vector<1x32xbf16>, vector<128x32xbf16>, vector<1x128xf32> -> vector<1x128xf32>
    %12 = vector.shape_cast %11 : vector<1x128xf32> to vector<1x1x128xf32>
    %c0_9 = arith.constant 0 : index
    %c0_10 = arith.constant 0 : index
    %c0_11 = arith.constant 0 : index
    %13 = vector.load %arg5[%c0_9, %c0_10, %c0_11] : memref<1x1x128xf32, #tpu.memory_space<vmem>>, vector<1x1x128xf32>
    tpu.vector_store %arg5[%c0_9, %c0_10, %c0_11], %12 {strides = array<i32>} : memref<1x1x128xf32, #tpu.memory_space<vmem>>, vector<1x1x128xf32>,
    return
  }
  func.func @transform_0(%arg0: i32) -> (i32, i32) {
    %c0_i32 = arith.constant 0 : i32
    %c0_i32_0 = arith.constant 0 : i32
    return %arg0, %c0_i32 : i32, i32
  }
  func.func @transform_1(%arg0: i32) -> (i32, i32) {
    %c0_i32 = arith.constant 0 : i32
    %c0_i32_0 = arith.constant 0 : i32
    %c0_i32_1 = arith.constant 0 : i32
    return %c0_i32, %c0_i32_0 : i32, i32
  }
  func.func @transform_2(%arg0: i32) -> (i32, i32) {
    %c0_i32 = arith.constant 0 : i32
    %c0_i32_0 = arith.constant 0 : i32
    %c0_i32_1 = arith.constant 0 : i32
    return %c0_i32, %c0_i32_0 : i32, i32
  }
  func.func @transform_3(%arg0: i32) -> (i32, i32) {
    %c0_i32 = arith.constant 0 : i32
    %c0_i32_0 = arith.constant 0 : i32
    %c0_i32_1 = arith.constant 0 : i32
    return %c0_i32, %c0_i32_0 : i32, i32
  }
  func.func @transform_4(%arg0: i32) -> (i32, i32, i32) {
    %c0_i32 = arith.constant 0 : i32
    %c0_i32_0 = arith.constant 0 : i32
    %c0_i32_1 = arith.constant 0 : i32
    return %arg0, %c0_i32, %c0_i32_0 : i32, i32, i32
  }
}

module attributes {stable_mosaic.version = 11 : i64} {
  func.func @_mlp_kernel(%arg0: i32, %arg1: memref<128x32xf32, #tpu.memory_space<vmem>>, %arg2: memref<32x32xbf16, #tpu.memory_space<vmem>>, %arg3: memref<1x32xf32, #tpu.memory_space<vmem>>, %arg4: memref<1x32xbf16, #tpu.memory_space<vmem>>, %arg5: memref<1x1x128xf32, #tpu.memory_space<vmem>>) attributes {dimension_semantics = [#tpu.dimension_semantics<parallel>], iteration_bounds = array<i64: 1>, scalar_prefetch = 0 : i64, scratch_operands = 0 : i64, tpu.core_type = #tpu.core_type<tc>, window_params = [{transform_indices = @transform_0, window_bounds = array<i64: 128, 32>}, {pipeline_mode = #tpu.pipeline_mode<synchronous>, transform_indices = @transform_1, window_bounds = array<i64: 32, 32>}, {pipeline_mode = #tpu.pipeline_mode<synchronous>, transform_indices = @transform_2, window_bounds = array<i64: 1, 32>}, {pipeline_mode = #tpu.pipeline_mode<synchronous>, transform_indices = @transform_3, window_bounds = array<i64: 1, 32>}, {transform_indices = @transform_4, window_bounds = array<i64: 1, 1, 128>}]} {
    %c0 = arith.constant 0 : index
    %c0_0 = arith.constant 0 : index
    %0 = vector.load %arg1[%c0, %c0_0] : memref<128x32xf32, #tpu.memory_space<vmem>>, vector<128x32xf32>
    %1 = arith.truncf %0 : vector<128x32xf32> to vector<128x32xbf16>
    %c0_1 = arith.constant 0 : index
    %c0_2 = arith.constant 0 : index
    %2 = vector.load %arg2[%c0_1, %c0_2] : memref<32x32xbf16, #tpu.memory_space<vmem>>, vector<32x32xbf16>
    %c0_3 = arith.constant 0 : index
    %c0_4 = arith.constant 0 : index
    %3 = vector.load %arg3[%c0_3, %c0_4] : memref<1x32xf32, #tpu.memory_space<vmem>>, vector<1x32xf32>
    %cst = arith.constant dense<0.000000e+00> : vector<128x32xf32>
    %4 = tpu.matmul %1, %2, %cst {dimension_numbers = #tpu.dot_dimension_numbers<[1], [0], [0], [1], [0, 0, 1, 1], [], []>} : vector<128x32xbf16>, vector<32x32xbf16>, vector<128x32xf32> -> vector<128x32xf32>
    %5 = vector.broadcast %3 : vector<1x32xf32> to vector<128x32xf32>
    %6 = arith.addf %4, %5 : vector<128x32xf32>
    %cst_5 = arith.constant 0.000000e+00 : f32
    %7 = vector.broadcast %cst_5 : f32 to vector<128x32xf32>
    %8 = arith.maximumf %6, %7 : vector<128x32xf32>
    %9 = arith.truncf %8 : vector<128x32xf32> to vector<128x32xbf16>
    %c0_6 = arith.constant 0 : index
    %c0_7 = arith.constant 0 : index
    %10 = vector.load %arg4[%c0_6, %c0_7] : memref<1x32xbf16, #tpu.memory_space<vmem>>, vector<1x32xbf16>
    %cst_8 = arith.constant dense<0.000000e+00> : vector<1x128xf32>
    %11 = tpu.matmul %10, %9, %cst_8 {dimension_numbers = #tpu.dot_dimension_numbers<[1], [1], [0], [0], [0, 0, 1, 0], [], []>} : vector<1x32xbf16>, vector<128x32xbf16>, vector<1x128xf32> -> vector<1x128xf32>
    %12 = vector.shape_cast %11 : vector<1x128xf32> to vector<1x1x128xf32>
    %c0_9 = arith.constant 0 : index
    %c0_10 = arith.constant 0 : index
    %c0_11 = arith.constant 0 : index
    %13 = vector.load %arg5[%c0_9, %c0_10, %c0_11] : memref<1x1x128xf32, #tpu.memory_space<vmem>>, vector<1x1x128xf32>
    tpu.vector_store %arg5[%c0_9, %c0_10, %c0_11], %12 {strides = array<i32>} : memref<1x1x128xf32, #tpu.memory_space<vmem>>, vector<1x1x128xf32>,
    return
  }
  func.func @transform_0(%arg0: i32) -> (i32, i32) {
    %c0_i32 = arith.constant 0 : i32
    %c0_i32_0 = arith.constant 0 : i32
    return %arg0, %c0_i32 : i32, i32
  }
  func.func @transform_1(%arg0: i32) -> (i32, i32) {
    %c0_i32 = arith.constant 0 : i32
    %c0_i32_0 = arith.constant 0 : i32
    %c0_i32_1 = arith.constant 0 : i32
    return %c0_i32, %c0_i32_0 : i32, i32
  }
  func.func @transform_2(%arg0: i32) -> (i32, i32) {
    %c0_i32 = arith.constant 0 : i32
    %c0_i32_0 = arith.constant 0 : i32
    %c0_i32_1 = arith.constant 0 : i32
    return %c0_i32, %c0_i32_0 : i32, i32
  }
  func.func @transform_3(%arg0: i32) -> (i32, i32) {
    %c0_i32 = arith.constant 0 : i32
    %c0_i32_0 = arith.constant 0 : i32
    %c0_i32_1 = arith.constant 0 : i32
    return %c0_i32, %c0_i32_0 : i32, i32
  }
  func.func @transform_4(%arg0: i32) -> (i32, i32, i32) {
    %c0_i32 = arith.constant 0 : i32
    %c0_i32_0 = arith.constant 0 : i32
    %c0_i32_1 = arith.constant 0 : i32
    return %arg0, %c0_i32, %c0_i32_0 : i32, i32, i32
  }
}

</mosaic_0001>

<bundles_post_ra>
// kernel: tpu_custom_call.1
= control target key start
LH: loop header
LB: loop body
LE: loop exit
PB: predicated region body
PF: predicated region fallthrough
CT: control target
= control target key end

     0   :  { %s394_s0 = inlined_call_operand.vmem [shape: f32[128,32], index: 0, kind: input, shape index: {}]   ;;  %s395_s1 = inlined_call_operand.vmem [shape: bf16[32,32], index: 1, kind: input, shape index: {}]   ;;  %s396_s2 = inlined_call_operand.vmem [shape: f32[1,32], index: 2, kind: input, shape index: {}]   ;;  %s397_s3 = inlined_call_operand.vmem [shape: bf16[1,32], index: 3, kind: input, shape index: {}]   ;;  %s398_s4 = inlined_call_operand.hbm [shape: f32[1,1,128], index: 4, kind: output, shape index: {}]  }
   0x1   :  { %v237_v0 = vld [vmem:[%s395_s1 + $0x8] sm:$0xff]  ;;  %v236_v1 = vld [vmem:[%s395_s1] sm:$0xff] }
   0x2   :  { %239 = vmatpush.bf16.msra.mxu3 %v237_v0  ;;  %v27_v2 = vld [vmem:[%s394_s0 + $0x40] sm:$0xff]  ;;  %v28_v3 = vld [vmem:[%s394_s0 + $0x48] sm:$0xff]  ;;  %94 = vmatpush.bf16.msra.mxu0 %v237_v0 }
   0x3   :  { %238 = vmatpush.bf16.msra.mxu2 %v237_v0 }
   0x4   :  { %9 = vsyncpa [#allocation3], 0  ;;  %v39_v4 = vpack.c.bf16 %v28_v3, %v27_v2  ;;  %vm63_vm0 = vcmask 261120   ;;  %v29_v5 = vld [vmem:[%s394_s0 + $0x50] sm:$0xff]  ;;  %v30_v6 = vld [vmem:[%s394_s0 + $0x58] sm:$0xff]  ;;  %s270_s25 = smov [#allocation2]  }
   0x5   :  { %v40_v7 = vpack.c.bf16 %v30_v6, %v29_v5  ;;  %v19_v8 = vld [vmem:[%s394_s0] sm:$0xff]  ;;  %v20_v9 = vld [vmem:[%s394_s0 + $0x8] sm:$0xff]  ;;  %v25_v11 = vld [vmem:[%s394_s0 + $0x30] sm:$0xff]  ;;  %s208_s26 = sshll.u32 %s270_s25, 4  ;;  %s210_s29 = sshll.u32 %s398_s4, 4  ;;  %s209_s26 = int_to_ptr.vmem [resolvable:$true] %s208_s26  ;;  %s211_s29 = int_to_ptr.hbm [resolvable:$true] %s210_s29 }
   0x6   :  { %241 = vmatpush.bf16.msra.mxu3 %v236_v1  ;;  %95 = vmatpush.bf16.msra.mxu0 %v236_v1  ;;  %v35_v10 = vpack.c.bf16 %v20_v9, %v19_v8  ;;  %v26_v12 = vld [vmem:[%s394_s0 + $0x38] sm:$0xff]  ;;  %v31_v14 = vld [vmem:[%s394_s0 + $0x60] sm:$0xff]  ;;  %v32_v15 = vld [vmem:[%s394_s0 + $0x68] sm:$0xff] }
   0x7   :  { %240 = vmatpush.bf16.msra.mxu2 %v236_v1  ;;  %v38_v13 = vpack.c.bf16 %v26_v12, %v25_v11  ;;  %v41_v16 = vpack.c.bf16 %v32_v15, %v31_v14  ;;  %v21_v17 = vld [vmem:[%s394_s0 + $0x10] sm:$0xff]  ;;  %v22_v18 = vld [vmem:[%s394_s0 + $0x18] sm:$0xff]  ;;  %v23_v23 = vld [vmem:[%s394_s0 + $0x20] sm:$0xff] }
   0x8   :  { %v36_v19 = vpack.c.bf16 %v22_v18, %v21_v17  ;;  %v33_v20 = vld [vmem:[%s394_s0 + $0x70] sm:$0xff]  ;;  %v34_v21 = vld [vmem:[%s394_s0 + $0x78] sm:$0xff]  ;;  %v24_v24 = vld [vmem:[%s394_s0 + $0x28] sm:$0xff] }
   0x9   :  { %231 = vmatmul.msk.bf16.vlgmr.msra.gmra.mxu3 %vm63_vm0, %v39_v4  ;;  %227 = vmatmul.msk.bf16.vlgmr.msra.gmra.mxu0 %vm63_vm0, %v35_v10  ;;  %v42_v22 = vpack.c.bf16 %v34_v21, %v33_v20  ;;  %v37_v25 = vpack.c.bf16 %v24_v24, %v23_v23  ;;  %v361_v27 = vld [vmem:[%s396_s2] ss:$0 sm:$0xff] }
   0xa   :  { %230 = vmatmul.msk.bf16.vlgmr.msra.gmra.mxu2 %vm63_vm0, %v38_v13 }
  0x19   :  { %232 = vmatmul.msk.bf16.gmra.mxu3 %vm63_vm0, %v40_v7  ;;  %228 = vmatmul.msk.bf16.gmra.mxu0 %vm63_vm0, %v36_v19 }
  0x29   :  { %233 = vmatmul.msk.bf16.gmra.mxu3 %vm63_vm0, %v41_v16  ;;  %229 = vmatmul.msk.bf16.gmra.mxu0 %vm63_vm0, %v37_v25 }
  0x39   :  { %234 = vmatmul.msk.bf16.gmra.mxu3 %vm63_vm0, %v42_v22 }
  0x86   :  { %v97_v37 = vpop.f32.mrf.mxu0 }
  0x87   :  { %v98_v19 = vadd.f32 %v361_v27, %v97_v37 }
  0x89   :  { %v137_v22 = vmax.f32 %v98_v19, 0.0 }
  0x8c   :  { %v117_v26 = vpop.f32.mrf.mxu3 }
  0x8d   :  { %v118_v28 = vadd.f32 %v361_v27, %v117_v26  ;;  %v112_v57 = vpop.f32.mrf.mxu2 }
  0x8e   :  { %v99_v40 = vpop.f32.mrf.mxu0  ;;  %v113_v1 = vadd.f32 %v361_v27, %v112_v57 }
  0x8f   :  { %v145_v31 = vmax.f32 %v118_v28, 0.0  ;;  %v100_v20 = vadd.f32 %v361_v27, %v99_v40  ;;  %v161_v28 = vld [vmem:[%s397_s3] sm:$0x1] }
  0x90   :  { %v143_v3 = vmax.f32 %v113_v1, 0.0 }
  0x91   :  { %v138_v23 = vmax.f32 %v100_v20, 0.0 }
  0x93   :  { %v153_v25 = vpack.c.bf16 %v138_v23, %v137_v22 }
  0x94   :  { %v119_v29 = vpop.f32.mrf.mxu3 }
  0x95   :  { %v120_v30 = vadd.f32 %v361_v27, %v119_v29  ;;  %v114_v0 = vpop.f32.mrf.mxu2  ;;  %v166_v26 = vsel %vm63_vm0, %v153_v25, 0 }
  0x96   :  { %v102_v44 = vpop.f32.mrf.mxu0  ;;  %v115_v2 = vadd.f32 %v361_v27, %v114_v0 }
  0x97   :  { %v146_v32 = vmax.f32 %v120_v30, 0.0  ;;  %v103_v13 = vadd.f32 %v361_v27, %v102_v44 }
  0x98   :  { %v144_v4 = vmax.f32 %v115_v2, 0.0 }
  0x99   :  { %v157_v33 = vpack.c.bf16 %v146_v32, %v145_v31  ;;  %v139_v16 = vmax.f32 %v103_v13, 0.0 }
  0x9a   :  { %v156_v9 = vpack.c.bf16 %v144_v4, %v143_v3 }
  0x9b   :  { %v178_v5 = vsel %vm63_vm0, %v157_v33, 0 }
  0x9c   :  { %v122_v34 = vpop.f32.mrf.mxu3  ;;  %v175_v12 = vsel %vm63_vm0, %v156_v9, 0 }
  0x9d   :  { %v123_v56 = vadd.f32 %v361_v27, %v122_v34 }
  0x9e   :  { %v104_v55 = vpop.f32.mrf.mxu0 }
  0x9f   :  { %v147_v60 = vmax.f32 %v123_v56, 0.0  ;;  %v105_v14 = vadd.f32 %v361_v27, %v104_v55 }
  0xa1   :  { %v140_v17 = vmax.f32 %v105_v14, 0.0 }
  0xa3   :  { %v154_v21 = vpack.c.bf16 %v140_v17, %v139_v16 }
  0xa4   :  { %v124_v35 = vpop.f32.mrf.mxu3 }
  0xa5   :  { %v125_v53 = vadd.f32 %v361_v27, %v124_v35  ;;  %v169_v24 = vsel %vm63_vm0, %v154_v21, 0 }
  0xa6   :  { %v107_v62 = vpop.f32.mrf.mxu0 }
  0xa7   :  { %v148_v58 = vmax.f32 %v125_v53, 0.0  ;;  %v108_v7 = vadd.f32 %v361_v27, %v107_v62 }
  0xa9   :  { %v158_v61 = vpack.c.bf16 %v148_v58, %v147_v60  ;;  %v141_v10 = vmax.f32 %v108_v7, 0.0 }
  0xab   :  { %v181_v63 = vsel %vm63_vm0, %v158_v61, 0 }
  0xac   :  { %v127_v36 = vpop.f32.mrf.mxu3 }
  0xad   :  { %v128_v48 = vadd.f32 %v361_v27, %v127_v36 }
  0xae   :  { %v109_v6 = vpop.f32.mrf.mxu0 }
  0xaf   :  { %v149_v52 = vmax.f32 %v128_v48, 0.0  ;;  %v110_v8 = vadd.f32 %v361_v27, %v109_v6 }
  0xb1   :  { %v142_v11 = vmax.f32 %v110_v8, 0.0 }
  0xb3   :  { %v155_v15 = vpack.c.bf16 %v142_v11, %v141_v10 }
  0xb4   :  { %v129_v38 = vpop.f32.mrf.mxu3 }
  0xb5   :  { %v130_v45 = vadd.f32 %v361_v27, %v129_v38  ;;  %v172_v18 = vsel %vm63_vm0, %v155_v15, 0 }
  0xb7   :  { %v150_v50 = vmax.f32 %v130_v45, 0.0 }
  0xb9   :  { %v159_v54 = vpack.c.bf16 %v150_v50, %v149_v52 }
  0xbb   :  { %v184_v59 = vsel %vm63_vm0, %v159_v54, 0 }
  0xbc   :  { %v132_v39 = vpop.f32.mrf.mxu3 }
  0xbd   :  { %v133_v41 = vadd.f32 %v361_v27, %v132_v39 }
  0xbf   :  { %v151_v46 = vmax.f32 %v133_v41, 0.0 }
  0xc4   :  { %v134_v42 = vpop.f32.mrf.mxu3 }
  0xc5   :  { %v135_v43 = vadd.f32 %v361_v27, %v134_v42 }
  0xc7   :  { %v152_v47 = vmax.f32 %v135_v43, 0.0 }
  0xc9   :  { %v160_v49 = vpack.c.bf16 %v152_v47, %v151_v46 }
  0xcb   :  { %v187_v51 = vsel %vm63_vm0, %v160_v49, 0 }
  0xcc   :  { %189 = vmatpush.bf16.xpose.msra.mxu1 %v187_v51 }
  0xd4   :  { %190 = vmatpush.bf16.xpose.msra.mxu1 %v184_v59 }
  0xdc   :  { %191 = vmatpush.bf16.xpose.msra.mxu1 %v181_v63 }
  0xe4   :  { %192 = vmatpush.bf16.xpose.msra.mxu1 %v178_v5 }
  0xec   :  { %193 = vmatpush.bf16.xpose.msra.mxu1 %v175_v12 }
  0xf4   :  { %194 = vmatpush.bf16.xpose.msra.mxu1 %v172_v18 }
  0xfc   :  { %195 = vmatpush.bf16.xpose.msra.mxu1 %v169_v24 }
 0x104   :  { %196 = vmatpush.bf16.xpose.msra.mxu1 %v166_v26 }
 0x10b   :  { %235 = vmatmul.msk.bf16.vlgmr.msra.gmra.mxu1 %vm63_vm0, %v161_v28 }
 0x188   :  { %v198_v27 = vpop.f32.mrf.mxu1 }
 0x189   :  { %202 = vst [vmem:[#allocation2] sm:$0x1] %v198_v27 }
 0x18a   :  { %213 = dma.vmem_to_hbm [thread:$0]  %s209_s26, 16, %s211_s29, [#allocation3]  }
 0x190   :  { %v200_v29 = vpop.f32.mrf.mxu1 }
 0x191   :  { %268 = dma.done.wait [#allocation3], 16  }
 0x192   :  { %269 = vsyncadd [#allocation3], 4294967280 }
 0x193   :  { %218 = vsyncpa [#allocation3], 1 }

// kernel: tpu_custom_call.1
= control target key start
LH: loop header
LB: loop body
LE: loop exit
PB: predicated region body
PF: predicated region fallthrough
CT: control target
= control target key end

     0   :  { %s394_s0 = inlined_call_operand.vmem [shape: f32[128,32], index: 0, kind: input, shape index: {}]   ;;  %s395_s1 = inlined_call_operand.vmem [shape: bf16[32,32], index: 1, kind: input, shape index: {}]   ;;  %s396_s2 = inlined_call_operand.vmem [shape: f32[1,32], index: 2, kind: input, shape index: {}]   ;;  %s397_s3 = inlined_call_operand.vmem [shape: bf16[1,32], index: 3, kind: input, shape index: {}]   ;;  %s398_s4 = inlined_call_operand.hbm [shape: f32[1,1,128], index: 4, kind: output, shape index: {}]  }
   0x1   :  { %v237_v0 = vld [vmem:[%s395_s1 + $0x8] sm:$0xff]  ;;  %v236_v1 = vld [vmem:[%s395_s1] sm:$0xff] }
   0x2   :  { %239 = vmatpush.bf16.msra.mxu3 %v237_v0  ;;  %v27_v2 = vld [vmem:[%s394_s0 + $0x40] sm:$0xff]  ;;  %v28_v3 = vld [vmem:[%s394_s0 + $0x48] sm:$0xff]  ;;  %94 = vmatpush.bf16.msra.mxu0 %v237_v0 }
   0x3   :  { %238 = vmatpush.bf16.msra.mxu2 %v237_v0 }
   0x4   :  { %9 = vsyncpa [#allocation3], 0  ;;  %v39_v4 = vpack.c.bf16 %v28_v3, %v27_v2  ;;  %vm63_vm0 = vcmask 261120   ;;  %v29_v5 = vld [vmem:[%s394_s0 + $0x50] sm:$0xff]  ;;  %v30_v6 = vld [vmem:[%s394_s0 + $0x58] sm:$0xff]  ;;  %s270_s25 = smov [#allocation2]  }
   0x5   :  { %v40_v7 = vpack.c.bf16 %v30_v6, %v29_v5  ;;  %v19_v8 = vld [vmem:[%s394_s0] sm:$0xff]  ;;  %v20_v9 = vld [vmem:[%s394_s0 + $0x8] sm:$0xff]  ;;  %v25_v11 = vld [vmem:[%s394_s0 + $0x30] sm:$0xff]  ;;  %s208_s26 = sshll.u32 %s270_s25, 4  ;;  %s210_s29 = sshll.u32 %s398_s4, 4  ;;  %s209_s26 = int_to_ptr.vmem [resolvable:$true] %s208_s26  ;;  %s211_s29 = int_to_ptr.hbm [resolvable:$true] %s210_s29 }
   0x6   :  { %241 = vmatpush.bf16.msra.mxu3 %v236_v1  ;;  %95 = vmatpush.bf16.msra.mxu0 %v236_v1  ;;  %v35_v10 = vpack.c.bf16 %v20_v9, %v19_v8  ;;  %v26_v12 = vld [vmem:[%s394_s0 + $0x38] sm:$0xff]  ;;  %v31_v14 = vld [vmem:[%s394_s0 + $0x60] sm:$0xff]  ;;  %v32_v15 = vld [vmem:[%s394_s0 + $0x68] sm:$0xff] }
   0x7   :  { %240 = vmatpush.bf16.msra.mxu2 %v236_v1  ;;  %v38_v13 = vpack.c.bf16 %v26_v12, %v25_v11  ;;  %v41_v16 = vpack.c.bf16 %v32_v15, %v31_v14  ;;  %v21_v17 = vld [vmem:[%s394_s0 + $0x10] sm:$0xff]  ;;  %v22_v18 = vld [vmem:[%s394_s0 + $0x18] sm:$0xff]  ;;  %v23_v23 = vld [vmem:[%s394_s0 + $0x20] sm:$0xff] }
   0x8   :  { %v36_v19 = vpack.c.bf16 %v22_v18, %v21_v17  ;;  %v33_v20 = vld [vmem:[%s394_s0 + $0x70] sm:$0xff]  ;;  %v34_v21 = vld [vmem:[%s394_s0 + $0x78] sm:$0xff]  ;;  %v24_v24 = vld [vmem:[%s394_s0 + $0x28] sm:$0xff] }
   0x9   :  { %231 = vmatmul.msk.bf16.vlgmr.msra.gmra.mxu3 %vm63_vm0, %v39_v4  ;;  %227 = vmatmul.msk.bf16.vlgmr.msra.gmra.mxu0 %vm63_vm0, %v35_v10  ;;  %v42_v22 = vpack.c.bf16 %v34_v21, %v33_v20  ;;  %v37_v25 = vpack.c.bf16 %v24_v24, %v23_v23  ;;  %v361_v27 = vld [vmem:[%s396_s2] ss:$0 sm:$0xff] }
   0xa   :  { %230 = vmatmul.msk.bf16.vlgmr.msra.gmra.mxu2 %vm63_vm0, %v38_v13 }
  0x19   :  { %232 = vmatmul.msk.bf16.gmra.mxu3 %vm63_vm0, %v40_v7  ;;  %228 = vmatmul.msk.bf16.gmra.mxu0 %vm63_vm0, %v36_v19 }
  0x29   :  { %233 = vmatmul.msk.bf16.gmra.mxu3 %vm63_vm0, %v41_v16  ;;  %229 = vmatmul.msk.bf16.gmra.mxu0 %vm63_vm0, %v37_v25 }
  0x39   :  { %234 = vmatmul.msk.bf16.gmra.mxu3 %vm63_vm0, %v42_v22 }
  0x86   :  { %v97_v37 = vpop.f32.mrf.mxu0 }
  0x87   :  { %v98_v19 = vadd.f32 %v361_v27, %v97_v37 }
  0x89   :  { %v137_v22 = vmax.f32 %v98_v19, 0.0 }
  0x8c   :  { %v117_v26 = vpop.f32.mrf.mxu3 }
  0x8d   :  { %v118_v28 = vadd.f32 %v361_v27, %v117_v26  ;;  %v112_v57 = vpop.f32.mrf.mxu2 }
  0x8e   :  { %v99_v40 = vpop.f32.mrf.mxu0  ;;  %v113_v1 = vadd.f32 %v361_v27, %v112_v57 }
  0x8f   :  { %v145_v31 = vmax.f32 %v118_v28, 0.0  ;;  %v100_v20 = vadd.f32 %v361_v27, %v99_v40  ;;  %v161_v28 = vld [vmem:[%s397_s3] sm:$0x1] }
  0x90   :  { %v143_v3 = vmax.f32 %v113_v1, 0.0 }
  0x91   :  { %v138_v23 = vmax.f32 %v100_v20, 0.0 }
  0x93   :  { %v153_v25 = vpack.c.bf16 %v138_v23, %v137_v22 }
  0x94   :  { %v119_v29 = vpop.f32.mrf.mxu3 }
  0x95   :  { %v120_v30 = vadd.f32 %v361_v27, %v119_v29  ;;  %v114_v0 = vpop.f32.mrf.mxu2  ;;  %v166_v26 = vsel %vm63_vm0, %v153_v25, 0 }
  0x96   :  { %v102_v44 = vpop.f32.mrf.mxu0  ;;  %v115_v2 = vadd.f32 %v361_v27, %v114_v0 }
  0x97   :  { %v146_v32 = vmax.f32 %v120_v30, 0.0  ;;  %v103_v13 = vadd.f32 %v361_v27, %v102_v44 }
  0x98   :  { %v144_v4 = vmax.f32 %v115_v2, 0.0 }
  0x99   :  { %v157_v33 = vpack.c.bf16 %v146_v32, %v145_v31  ;;  %v139_v16 = vmax.f32 %v103_v13, 0.0 }
  0x9a   :  { %v156_v9 = vpack.c.bf16 %v144_v4, %v143_v3 }
  0x9b   :  { %v178_v5 = vsel %vm63_vm0, %v157_v33, 0 }
  0x9c   :  { %v122_v34 = vpop.f32.mrf.mxu3  ;;  %v175_v12 = vsel %vm63_vm0, %v156_v9, 0 }
  0x9d   :  { %v123_v56 = vadd.f32 %v361_v27, %v122_v34 }
  0x9e   :  { %v104_v55 = vpop.f32.mrf.mxu0 }
  0x9f   :  { %v147_v60 = vmax.f32 %v123_v56, 0.0  ;;  %v105_v14 = vadd.f32 %v361_v27, %v104_v55 }
  0xa1   :  { %v140_v17 = vmax.f32 %v105_v14, 0.0 }
  0xa3   :  { %v154_v21 = vpack.c.bf16 %v140_v17, %v139_v16 }
  0xa4   :  { %v124_v35 = vpop.f32.mrf.mxu3 }
  0xa5   :  { %v125_v53 = vadd.f32 %v361_v27, %v124_v35  ;;  %v169_v24 = vsel %vm63_vm0, %v154_v21, 0 }
  0xa6   :  { %v107_v62 = vpop.f32.mrf.mxu0 }
  0xa7   :  { %v148_v58 = vmax.f32 %v125_v53, 0.0  ;;  %v108_v7 = vadd.f32 %v361_v27, %v107_v62 }
  0xa9   :  { %v158_v61 = vpack.c.bf16 %v148_v58, %v147_v60  ;;  %v141_v10 = vmax.f32 %v108_v7, 0.0 }
  0xab   :  { %v181_v63 = vsel %vm63_vm0, %v158_v61, 0 }
  0xac   :  { %v127_v36 = vpop.f32.mrf.mxu3 }
  0xad   :  { %v128_v48 = vadd.f32 %v361_v27, %v127_v36 }
  0xae   :  { %v109_v6 = vpop.f32.mrf.mxu0 }
  0xaf   :  { %v149_v52 = vmax.f32 %v128_v48, 0.0  ;;  %v110_v8 = vadd.f32 %v361_v27, %v109_v6 }
  0xb1   :  { %v142_v11 = vmax.f32 %v110_v8, 0.0 }
  0xb3   :  { %v155_v15 = vpack.c.bf16 %v142_v11, %v141_v10 }
  0xb4   :  { %v129_v38 = vpop.f32.mrf.mxu3 }
  0xb5   :  { %v130_v45 = vadd.f32 %v361_v27, %v129_v38  ;;  %v172_v18 = vsel %vm63_vm0, %v155_v15, 0 }
  0xb7   :  { %v150_v50 = vmax.f32 %v130_v45, 0.0 }
  0xb9   :  { %v159_v54 = vpack.c.bf16 %v150_v50, %v149_v52 }
  0xbb   :  { %v184_v59 = vsel %vm63_vm0, %v159_v54, 0 }
  0xbc   :  { %v132_v39 = vpop.f32.mrf.mxu3 }
  0xbd   :  { %v133_v41 = vadd.f32 %v361_v27, %v132_v39 }
  0xbf   :  { %v151_v46 = vmax.f32 %v133_v41, 0.0 }
  0xc4   :  { %v134_v42 = vpop.f32.mrf.mxu3 }
  0xc5   :  { %v135_v43 = vadd.f32 %v361_v27, %v134_v42 }
  0xc7   :  { %v152_v47 = vmax.f32 %v135_v43, 0.0 }
  0xc9   :  { %v160_v49 = vpack.c.bf16 %v152_v47, %v151_v46 }
  0xcb   :  { %v187_v51 = vsel %vm63_vm0, %v160_v49, 0 }
  0xcc   :  { %189 = vmatpush.bf16.xpose.msra.mxu1 %v187_v51 }
  0xd4   :  { %190 = vmatpush.bf16.xpose.msra.mxu1 %v184_v59 }
  0xdc   :  { %191 = vmatpush.bf16.xpose.msra.mxu1 %v181_v63 }
  0xe4   :  { %192 = vmatpush.bf16.xpose.msra.mxu1 %v178_v5 }
  0xec   :  { %193 = vmatpush.bf16.xpose.msra.mxu1 %v175_v12 }
  0xf4   :  { %194 = vmatpush.bf16.xpose.msra.mxu1 %v172_v18 }
  0xfc   :  { %195 = vmatpush.bf16.xpose.msra.mxu1 %v169_v24 }
 0x104   :  { %196 = vmatpush.bf16.xpose.msra.mxu1 %v166_v26 }
 0x10b   :  { %235 = vmatmul.msk.bf16.vlgmr.msra.gmra.mxu1 %vm63_vm0, %v161_v28 }
 0x188   :  { %v198_v27 = vpop.f32.mrf.mxu1 }
 0x189   :  { %202 = vst [vmem:[#allocation2] sm:$0x1] %v198_v27 }
 0x18a   :  { %213 = dma.vmem_to_hbm [thread:$0]  %s209_s26, 16, %s211_s29, [#allocation3]  }
 0x190   :  { %v200_v29 = vpop.f32.mrf.mxu1 }
 0x191   :  { %268 = dma.done.wait [#allocation3], 16  }
 0x192   :  { %269 = vsyncadd [#allocation3], 4294967280 }
 0x193   :  { %218 = vsyncpa [#allocation3], 1 }

</bundles_post_ra>
